<compile_context>
chip_gen: v7x
topology: tpu7x:2x2x1
jax: 0.10.0
libtpu: 0.0.40
codegen_flags: <defaults>
</compile_context>

<pallas_src>
import jax
import jax.numpy as jnp
from jax.experimental import pallas as pl
from jax.experimental.pallas import tpu as pltpu


def mlp_kernel(xt_ref, w1t_ref, b1t_ref, w2t_ref, b2t_ref, w3t_ref, b3t_ref, o_ref):
    # lin1 + ReLU.  in_features == 1 -> broadcast outer product on the VPU:
    # (H,1) * (1,tb) + (H,1)  ->  (H, tb), batch lane-dense.
    h1 = w1t_ref[...] * xt_ref[...] + b1t_ref[...]
    h1 = jnp.maximum(h1, 0.0)

    # lin2 + ReLU (MXU, f32 accumulation): (H,H) @ (H,tb) -> (H,tb).
    h2 = jnp.dot(w2t_ref[...], h1, preferred_element_type=jnp.float32) + b2t_ref[...]
    h2 = jnp.maximum(h2, 0.0)

    # fc: (OUT,H) @ (H,tb) -> (OUT,tb).
    logits = jnp.dot(w3t_ref[...], h2, preferred_element_type=jnp.float32) + b3t_ref[...]

    # Exact, numerically stable sigmoid (single exp on the EUP, exact divide).
    z = jnp.exp(-jnp.abs(logits))
    o_ref[...] = jnp.where(logits >= 0, 1.0 / (1.0 + z), z / (1.0 + z))


def mlp_forward(x, params, *, tile_b=2048):
    """x: (B, in_features); params stored as (in, out) weights + (1, out) biases."""
    w1, b1, w2, b2, w3, b3 = params
    B, IN = x.shape
    HID = w2.shape[0]
    OUT = w3.shape[1]
    # Kernel specializes lin1 for the module's in_features == 1.
    assert IN == 1 and w1.shape == (1, HID)

    # Batch tiling (batch on the lane axis).  Whole batch as one full-extent
    # block if small; otherwise lane-aligned tiles with the batch padded up.
    if B <= tile_b:
        tb, pb = B, B
    else:
        tb = tile_b
        pb = pl.cdiv(B, tb) * tb

    # Transpose so batch is the last (lane) dimension; pad padded columns with 0.
    xt = x.T                                   # (1, B)
    if pb != B:
        xt = jnp.pad(xt, ((0, 0), (0, pb - B)))

    # Pre-transpose weights once; they stay resident in VMEM across grid steps.
    w1t, b1t = w1.T, b1.T                      # (H, 1), (H, 1)
    w2t, b2t = w2.T, b2.T                      # (H, H), (H, 1)
    w3t, b3t = w3.T, b3.T                      # (OUT, H), (OUT, 1)

    resident = lambda i: (0, 0)

    cost = pl.CostEstimate(
        flops=2 * pb * (IN * HID + HID * HID + HID * OUT),
        transcendentals=pb * OUT,
        bytes_accessed=4 * (pb * IN + pb * OUT
                            + IN * HID + HID + HID * HID + HID + HID * OUT + OUT),
    )

    out_t = pl.pallas_call(
        mlp_kernel,
        out_shape=jax.ShapeDtypeStruct((OUT, pb), jnp.float32),
        grid=(pb // tb,),
        in_specs=[
            pl.BlockSpec((IN, tb), lambda i: (0, i)),    # x^T: tiled over batch lanes
            pl.BlockSpec((HID, IN), resident),           # w1^T
            pl.BlockSpec((HID, 1), resident),            # b1^T
            pl.BlockSpec((HID, HID), resident),          # w2^T
            pl.BlockSpec((HID, 1), resident),            # b2^T
            pl.BlockSpec((OUT, HID), resident),          # w3^T
            pl.BlockSpec((OUT, 1), resident),            # b3^T
        ],
        out_specs=pl.BlockSpec((OUT, tb), lambda i: (0, i)),
        compiler_params=pltpu.CompilerParams(
            dimension_semantics=("parallel",)),
        cost_estimate=cost,
    )(xt, w1t, b1t, w2t, b2t, w3t, b3t)

    out_t = out_t if pb == B else out_t[:, :B]
    return out_t.T                              # back to (B, OUT)


def init_params(key, in_dim=1, hidden=20, out=10):
    # PyTorch nn.Linear default init: U(-1/sqrt(fan_in), 1/sqrt(fan_in)).
    ks = jax.random.split(key, 6)

    def lin(kw, kb, fan_in, fan_out):
        bound = 1.0 / jnp.sqrt(jnp.float32(fan_in))
        w = jax.random.uniform(kw, (fan_in, fan_out), jnp.float32, -bound, bound)
        b = jax.random.uniform(kb, (1, fan_out), jnp.float32, -bound, bound)
        return w, b

    w1, b1 = lin(ks[0], ks[1], in_dim, hidden)
    w2, b2 = lin(ks[2], ks[3], hidden, hidden)
    w3, b3 = lin(ks[4], ks[5], hidden, out)
    return (w1, b1, w2, b2, w3, b3)


def _reference(x, params):
    w1, b1, w2, b2, w3, b3 = params
    h = jax.nn.relu(x @ w1 + b1)
    h = jax.nn.relu(h @ w2 + b2)
    return jax.nn.sigmoid(h @ w3 + b3)


if __name__ == "__main__":
    key = jax.random.PRNGKey(0)
    kx, kx2, kp = jax.random.split(key, 3)

    IN, HID, OUT = 1, 20, 10
    params = init_params(kp, IN, HID, OUT)

    # Small batch: single full-extent block (grid size 1).
    B = 8
    x = jax.random.normal(kx, (B, IN), jnp.float32)
    out = jax.block_until_ready(mlp_forward(x, params))
    ref = _reference(x, params)
    assert out.shape == (B, OUT)
    assert jnp.allclose(out, ref, atol=1e-5, rtol=1e-5), float(jnp.max(jnp.abs(out - ref)))

    # Larger batch with an explicit small tile: exercises batch tiling +
    # lane padding + multi-step "parallel" grid path.
    B2 = 600
    x2 = jax.random.normal(kx2, (B2, IN), jnp.float32)
    out2 = jax.block_until_ready(mlp_forward(x2, params, tile_b=256))
    ref2 = _reference(x2, params)
    assert out2.shape == (B2, OUT)
    assert jnp.allclose(out2, ref2, atol=1e-5, rtol=1e-5), float(jnp.max(jnp.abs(out2 - ref2)))

    print("KERNEL_OK")
</pallas_src>

<mosaic_0001>
module attributes {stable_mosaic.version = 11 : i64} {
  func.func @mlp_kernel(%arg0: i32, %arg1: memref<1x8xf32, #tpu.memory_space<vmem>>, %arg2: memref<20x1xf32, #tpu.memory_space<vmem>>, %arg3: memref<20x1xf32, #tpu.memory_space<vmem>>, %arg4: memref<20x20xf32, #tpu.memory_space<vmem>>, %arg5: memref<20x1xf32, #tpu.memory_space<vmem>>, %arg6: memref<10x20xf32, #tpu.memory_space<vmem>>, %arg7: memref<10x1xf32, #tpu.memory_space<vmem>>, %arg8: memref<10x8xf32, #tpu.memory_space<vmem>>) attributes {dimension_semantics = [#tpu.dimension_semantics<parallel>], iteration_bounds = array<i64: 1>, scalar_prefetch = 0 : i64, scratch_operands = 0 : i64, tpu.core_type = #tpu.core_type<tc>, window_params = [{transform_indices = @transform_0, window_bounds = array<i64: 1, 8>}, {pipeline_mode = #tpu.pipeline_mode<synchronous>, transform_indices = @transform_1, window_bounds = array<i64: 20, 1>}, {pipeline_mode = #tpu.pipeline_mode<synchronous>, transform_indices = @transform_2, window_bounds = array<i64: 20, 1>}, {pipeline_mode = #tpu.pipeline_mode<synchronous>, transform_indices = @transform_3, window_bounds = array<i64: 20, 20>}, {pipeline_mode = #tpu.pipeline_mode<synchronous>, transform_indices = @transform_4, window_bounds = array<i64: 20, 1>}, {pipeline_mode = #tpu.pipeline_mode<synchronous>, transform_indices = @transform_5, window_bounds = array<i64: 10, 20>}, {pipeline_mode = #tpu.pipeline_mode<synchronous>, transform_indices = @transform_6, window_bounds = array<i64: 10, 1>}, {transform_indices = @transform_7, window_bounds = array<i64: 10, 8>}]} {
    %c0 = arith.constant 0 : index
    %c0_0 = arith.constant 0 : index
    %0 = vector.load %arg2[%c0, %c0_0] : memref<20x1xf32, #tpu.memory_space<vmem>>, vector<20x1xf32>
    %c0_1 = arith.constant 0 : index
    %c0_2 = arith.constant 0 : index
    %1 = vector.load %arg1[%c0_1, %c0_2] : memref<1x8xf32, #tpu.memory_space<vmem>>, vector<1x8xf32>
    %2 = vector.broadcast %0 : vector<20x1xf32> to vector<20x8xf32>
    %3 = vector.broadcast %1 : vector<1x8xf32> to vector<20x8xf32>
    %4 = arith.mulf %2, %3 : vector<20x8xf32>
    %c0_3 = arith.constant 0 : index
    %c0_4 = arith.constant 0 : index
    %5 = vector.load %arg3[%c0_3, %c0_4] : memref<20x1xf32, #tpu.memory_space<vmem>>, vector<20x1xf32>
    %6 = vector.broadcast %5 : vector<20x1xf32> to vector<20x8xf32>
    %7 = arith.addf %4, %6 : vector<20x8xf32>
    %cst = arith.constant 0.000000e+00 : f32
    %8 = vector.broadcast %cst : f32 to vector<20x8xf32>
    %9 = arith.maximumf %7, %8 : vector<20x8xf32>
    %c0_5 = arith.constant 0 : index
    %c0_6 = arith.constant 0 : index
    %10 = vector.load %arg4[%c0_5, %c0_6] : memref<20x20xf32, #tpu.memory_space<vmem>>, vector<20x20xf32>
    %cst_7 = arith.constant dense<0.000000e+00> : vector<20x8xf32>
    %11 = tpu.matmul %10, %9, %cst_7 {dimension_numbers = #tpu.dot_dimension_numbers<[1], [0], [0], [1], [0, 0, 1, 1], [], []>} : vector<20x20xf32>, vector<20x8xf32>, vector<20x8xf32> -> vector<20x8xf32>
    %c0_8 = arith.constant 0 : index
    %c0_9 = arith.constant 0 : index
    %12 = vector.load %arg5[%c0_8, %c0_9] : memref<20x1xf32, #tpu.memory_space<vmem>>, vector<20x1xf32>
    %13 = vector.broadcast %12 : vector<20x1xf32> to vector<20x8xf32>
    %14 = arith.addf %11, %13 : vector<20x8xf32>
    %cst_10 = arith.constant 0.000000e+00 : f32
    %15 = vector.broadcast %cst_10 : f32 to vector<20x8xf32>
    %16 = arith.maximumf %14, %15 : vector<20x8xf32>
    %c0_11 = arith.constant 0 : index
    %c0_12 = arith.constant 0 : index
    %17 = vector.load %arg6[%c0_11, %c0_12] : memref<10x20xf32, #tpu.memory_space<vmem>>, vector<10x20xf32>
    %cst_13 = arith.constant dense<0.000000e+00> : vector<10x8xf32>
    %18 = tpu.matmul %17, %16, %cst_13 {dimension_numbers = #tpu.dot_dimension_numbers<[1], [0], [0], [1], [0, 0, 1, 1], [], []>} : vector<10x20xf32>, vector<20x8xf32>, vector<10x8xf32> -> vector<10x8xf32>
    %c0_14 = arith.constant 0 : index
    %c0_15 = arith.constant 0 : index
    %19 = vector.load %arg7[%c0_14, %c0_15] : memref<10x1xf32, #tpu.memory_space<vmem>>, vector<10x1xf32>
    %20 = vector.broadcast %19 : vector<10x1xf32> to vector<10x8xf32>
    %21 = arith.addf %18, %20 : vector<10x8xf32>
    %22 = math.absf %21 : vector<10x8xf32>
    %cst_16 = arith.constant 0.000000e+00 : f32
    %23 = vector.broadcast %cst_16 : f32 to vector<10x8xf32>
    %24 = arith.subf %23, %22 : vector<10x8xf32>
    %25 = math.exp %24 : vector<10x8xf32>
    %cst_17 = arith.constant 0.000000e+00 : f32
    %26 = vector.broadcast %cst_17 : f32 to vector<10x8xf32>
    %27 = arith.cmpf oge, %21, %26 : vector<10x8xf32>
    %cst_18 = arith.constant 1.000000e+00 : f32
    %28 = vector.broadcast %cst_18 : f32 to vector<10x8xf32>
    %29 = arith.addf %28, %25 : vector<10x8xf32>
    %cst_19 = arith.constant 1.000000e+00 : f32
    %30 = vector.broadcast %cst_19 : f32 to vector<10x8xf32>
    %31 = arith.divf %30, %29 : vector<10x8xf32>
    %cst_20 = arith.constant 1.000000e+00 : f32
    %32 = vector.broadcast %cst_20 : f32 to vector<10x8xf32>
    %33 = arith.addf %32, %25 : vector<10x8xf32>
    %34 = arith.divf %25, %33 : vector<10x8xf32>
    %35 = arith.select %27, %31, %34 : vector<10x8xi1>, vector<10x8xf32>
    %c0_21 = arith.constant 0 : index
    %c0_22 = arith.constant 0 : index
    %36 = vector.load %arg8[%c0_21, %c0_22] : memref<10x8xf32, #tpu.memory_space<vmem>>, vector<10x8xf32>
    tpu.vector_store %arg8[%c0_21, %c0_22], %35 {strides = array<i32>} : memref<10x8xf32, #tpu.memory_space<vmem>>, vector<10x8xf32>,
    return
  }
  func.func @transform_0(%arg0: i32) -> (i32, i32) {
    %c0_i32 = arith.constant 0 : i32
    %c0_i32_0 = arith.constant 0 : i32
    return %c0_i32, %arg0 : i32, i32
  }
  func.func @transform_1(%arg0: i32) -> (i32, i32) {
    %c0_i32 = arith.constant 0 : i32
    %c0_i32_0 = arith.constant 0 : i32
    %c0_i32_1 = arith.constant 0 : i32
    return %c0_i32, %c0_i32_0 : i32, i32
  }
  func.func @transform_2(%arg0: i32) -> (i32, i32) {
    %c0_i32 = arith.constant 0 : i32
    %c0_i32_0 = arith.constant 0 : i32
    %c0_i32_1 = arith.constant 0 : i32
    return %c0_i32, %c0_i32_0 : i32, i32
  }
  func.func @transform_3(%arg0: i32) -> (i32, i32) {
    %c0_i32 = arith.constant 0 : i32
    %c0_i32_0 = arith.constant 0 : i32
    %c0_i32_1 = arith.constant 0 : i32
    return %c0_i32, %c0_i32_0 : i32, i32
  }
  func.func @transform_4(%arg0: i32) -> (i32, i32) {
    %c0_i32 = arith.constant 0 : i32
    %c0_i32_0 = arith.constant 0 : i32
    %c0_i32_1 = arith.constant 0 : i32
    return %c0_i32, %c0_i32_0 : i32, i32
  }
  func.func @transform_5(%arg0: i32) -> (i32, i32) {
    %c0_i32 = arith.constant 0 : i32
    %c0_i32_0 = arith.constant 0 : i32
    %c0_i32_1 = arith.constant 0 : i32
    return %c0_i32, %c0_i32_0 : i32, i32
  }
  func.func @transform_6(%arg0: i32) -> (i32, i32) {
    %c0_i32 = arith.constant 0 : i32
    %c0_i32_0 = arith.constant 0 : i32
    %c0_i32_1 = arith.constant 0 : i32
    return %c0_i32, %c0_i32_0 : i32, i32
  }
  func.func @transform_7(%arg0: i32) -> (i32, i32) {
    %c0_i32 = arith.constant 0 : i32
    %c0_i32_0 = arith.constant 0 : i32
    return %c0_i32, %arg0 : i32, i32
  }
}

</mosaic_0001>

<bundles_post_ra>
// kernel: tpu_custom_call.1
= control target key start
LH: loop header
LB: loop body
LE: loop exit
PB: predicated region body
PF: predicated region fallthrough
CT: control target
= control target key end

     0   :  { %v386_v0 = vmov 0   ;;  %v387_v9 = vmov 0.0|0.0   ;;  %vm388_vm0 = vmmov 0   ;;  %v389_v13 = vmov 0.0   ;;  %s498_s2 = inlined_call_operand.vmem [shape: f32[20,1], index: 2, kind: input, shape index: {}]   ;;  %s499_s1 = inlined_call_operand.vmem [shape: f32[20,1], index: 1, kind: input, shape index: {}]   ;;  %s500_s4 = inlined_call_operand.vmem [shape: f32[20,1], index: 4, kind: input, shape index: {}]   ;;  %s501_s6 = inlined_call_operand.vmem [shape: f32[10,1], index: 6, kind: input, shape index: {}]   ;;  %s502_s0 = inlined_call_operand.vmem [shape: f32[1,8], index: 0, kind: input, shape index: {}]   ;;  %s503_s3 = inlined_call_operand.vmem [shape: f32[20,20], index: 3, kind: input, shape index: {}]   ;;  %s504_s5 = inlined_call_operand.vmem [shape: f32[10,20], index: 5, kind: input, shape index: {}]   ;;  %s505_s7 = inlined_call_operand.vmem [shape: f32[10,8], index: 7, kind: output, shape index: {}]  }
   0x1   :  { %377 = vset.pattern.permute.xlu1 %v386_v0  ;;  %376 = vset.pattern.permute.xlu0 %v386_v0  ;;  %v54_v1 = vld [vmem:[%s498_s2] sm:$0xff]  ;;  %v55_v3 = vld [vmem:[%s498_s2 + $0x8] sm:$0xff]  ;;  %v56_v5 = vld [vmem:[%s498_s2 + $0x10] sm:$0xf]  ;;  %vm109_vm1 = vcmask 1043456   ;;  %vm99_vm2 = vcmask 162816  }
   0x2   :  { %v26_v2 = vld [vmem:[%s499_s1] sm:$0xff]  ;;  %59 = vperm.xlu1 %377, %v54_v1   ;;  %v27_v4 = vld [vmem:[%s499_s1 + $0x8] sm:$0xff]  ;;  %v28_v6 = vld [vmem:[%s499_s1 + $0x10] sm:$0xf]  ;;  %365 = vmatprep.subr.bf16.mxu0 %v387_v9  ;;  %vm316_vm3 = vcmask 58368   ;;  %vm314_vm5 = vcmask 64512  }
   0x3   :  { %32 = vperm.xlu0 %376, %v26_v2   ;;  %v82_v7 = vld [vmem:[%s500_s4 + $0x8] sm:$0xff]  ;;  %v81_v8 = vld [vmem:[%s500_s4] sm:$0xff]  ;;  %v83_v11 = vld [vmem:[%s500_s4 + $0x10] sm:$0xf]  ;;  %347 = vmatprep.mubr.msk.f32.mxu0 %vm388_vm0, %v389_v13 }
   0x4   :  { %v198_v10 = vld [vmem:[%s501_s6] sm:$0xff]  ;;  %v199_v12 = vld [vmem:[%s501_s6 + $0x8] sm:$0x3]  ;;  %v80_v33 = vld [vmem:[%s503_s3 + $0x10] sm:$0xf] }
   0x5   :  { %v322_v14 = vld [vmem:[%s502_s0] ss:$0 sm:$0xff]  ;;  %v79_v32 = vld [vmem:[%s503_s3 + $0x8] sm:$0xff] }
   0x6   :  { %64 = vperm.xlu1 %377, %v55_v3   ;;  %v78_v31 = vld [vmem:[%s503_s3] sm:$0xff]  ;;  %v197_v51 = vld [vmem:[%s504_s5 + $0x8] sm:$0x3] }
   0x7   :  { %37 = vperm.xlu0 %376, %v27_v4   ;;  %v196_v34 = vld [vmem:[%s504_s5] sm:$0xff] }
   0x8   :  { %362 = vmatprep.mubr.msk.f32.mxu1 %vm99_vm2, %v196_v34 }
   0xa   :  { %69 = vperm.xlu1 %377, %v56_v5  }
   0xb   :  { %42 = vperm.xlu0 %376, %v28_v6  }
   0xe   :  { %91 = vperm.xlu1 %377, %v82_v7  }
   0xf   :  { %86 = vperm.xlu0 %376, %v81_v8  }
  0x12   :  { %202 = vperm.xlu1 %377, %v198_v10  }
  0x13   :  { %96 = vperm.xlu0 %376, %v83_v11  }
  0x17   :  { %207 = vperm.xlu0 %376, %v199_v12  }
  0x81   :  { %v60_v15 = vpop.permute.xlu1 %59 }
  0x82   :  { %v33_v16 = vpop.permute.xlu0 %32 }
  0x83   :  { %v51_v17 = vmul.f32 %v322_v14, %v33_v16 }
  0x85   :  { %v65_v18 = vpop.permute.xlu1 %64  ;;  %v72_v20 = vadd.f32 %v60_v15, %v51_v17 }
  0x86   :  { %v38_v19 = vpop.permute.xlu0 %37 }
  0x87   :  { %v52_v21 = vmul.f32 %v322_v14, %v38_v19  ;;  %v75_v24 = vmax.f32 %v72_v20, 0.0 }
  0x89   :  { %v73_v22 = vadd.f32 %v65_v18, %v52_v21  ;;  %v70_v27 = vpop.permute.xlu1 %69 }
  0x8a   :  { %v43_v23 = vpop.permute.xlu0 %42 }
  0x8b   :  { %v76_v25 = vmax.f32 %v73_v22, 0.0  ;;  %v53_v26 = vmul.f32 %v322_v14, %v43_v23 }
  0x8d   :  { %v74_v28 = vadd.f32 %v70_v27, %v53_v26  ;;  %v366_v29 = vpack.c.bf16 %v76_v25, %v75_v24  ;;  %v92_v39 = vpop.permute.xlu1 %91 }
  0x8e   :  { %v87_v37 = vpop.permute.xlu0 %86 }
  0x8f   :  { %367 = vmatpush3.bf16.msra.mxu0 %v366_v29  ;;  %v77_v30 = vmax.f32 %v74_v28, 0.0 }
  0x90   :  { %345 = vmatprep.subr.mxu0 %v389_v13 }
  0x91   :  { %v203_v54 = vpop.permute.xlu1 %202 }
  0x92   :  { %v97_v45 = vpop.permute.xlu0 %96 }
  0x93   :  { %346 = vmatpush3.msk.msra.mxu0 %vm109_vm1, %v77_v30 }
  0x94   :  { %348 = vmatmul.mubr.msk.f32.vlgmr.msra.gmra.mrb[0].mxu0 %vm99_vm2, %v78_v31 }
  0x95   :  { %350 = vmatprep.mubr.msk.f32.mxu0 %vm388_vm0, %v389_v13 }
  0x96   :  { %v208_v52 = vpop.permute.xlu0 %207 }
  0x98   :  { %351 = vmatmul.mubr.msk.f32.gmra.mrb[2].mxu0 %vm99_vm2, %v79_v32 }
  0x99   :  { %353 = vmatprep.mubr.msk.f32.mxu0 %vm388_vm0, %v389_v13 }
  0x9c   :  { %354 = vmatmul.mubr.msk.f32.gmra.mrb[4].mxu0 %vm99_vm2, %v80_v33 }
 0x167   :  { %v179_v35 = vpop.f32.mrb[0].mxu0 }
 0x168   :  { %v349_v36 = vpop.f32.mrb[1].mxu0  ;;  %v180_v38 = vadd.f32 %v179_v35, %v87_v37 }
 0x16a   :  { %v193_v43 = vmax.f32 %v180_v38, 0.0 }
 0x16b   :  { %v184_v40 = vpop.f32.mrb[2].mxu0 }
 0x16c   :  { %v185_v41 = vadd.f32 %v184_v40, %v92_v39  ;;  %v352_v42 = vpop.f32.mrb[3].mxu0 }
 0x16e   :  { %v194_v44 = vmax.f32 %v185_v41, 0.0 }
 0x16f   :  { %v189_v46 = vpop.f32.mrb[4].mxu0 }
 0x170   :  { %v190_v47 = vadd.f32 %v189_v46, %v97_v45  ;;  %v355_v48 = vpop.f32.mrb[5].mxu0  ;;  %v368_v49 = vpack.c.bf16 %v194_v44, %v193_v43 }
 0x172   :  { %v195_v50 = vmax.f32 %v190_v47, 0.0  ;;  %369 = vmatprep.subr.bf16.mxu1 %v368_v49 }
 0x173   :  { %371 = vmatpush3.bf16.msra.mxu1 %v368_v49 }
 0x174   :  { %360 = vmatprep.subr.msk.mxu1 %vm109_vm1, %v195_v50 }
 0x177   :  { %361 = vmatpush3.msk.msra.mxu1 %vm109_vm1, %v195_v50 }
 0x178   :  { %363 = vmatmul.mubr.msk.f32.vlgmr.msra.gmra.mrb[0].mxu1 %vm99_vm2, %v197_v51 }
 0x24b   :  { %v364_v53 = vpop.f32.mrb[0].mxu1 }
 0x24c   :  { %v291_v55 = vadd.f32 %v364_v53, %v208_v52  ;;  %v285_v56 = vpop.f32.mrb[1].mxu1 }
 0x24d   :  { %v286_v57 = vadd.f32 %v285_v56, %v203_v54 }
 0x24e   :  { %v295_v58 = vand.u32 2147483647, %v291_v55  ;;  %vm303_vm4 = vcmp.ge.f32.partialorder %v291_v55, 0.0 }
 0x24f   :  { %v294_v59 = vand.u32 2147483647, %v286_v57  ;;  %vm302_vm6 = vcmp.ge.f32.partialorder %v286_v57, 0.0 }
 0x250   :  { %v297_v60 = vsub.f32 0.0, %v295_v58 }
 0x251   :  { %v296_v61 = vsub.f32 0.0, %v294_v59 }
 0x252   :  { %v300_v62 = vmul.f32 1.442695, %v297_v60 }
 0x253   :  { %v298_v63 = vmul.f32 1.442695, %v296_v61 }
 0x254   :  { %378 = vpow2.f32 %v300_v62 }
 0x255   :  { %380 = vpow2.f32 %v298_v63 }
 0x25e   :  { %v379_v0 = vpop.eup %378 }
 0x25f   :  { %v381_v1 = vpop.eup %380  ;;  %v305_v2 = vadd.f32 1.0, %v379_v0 }
 0x260   :  { %v304_v3 = vadd.f32 1.0, %v381_v1 }
 0x261   :  { %382 = vrcp.f32 %v305_v2 }
 0x262   :  { %384 = vrcp.f32 %v304_v3 }
 0x26b   :  { %v383_v4 = vpop.eup %382 }
 0x26c   :  { %v385_v5 = vpop.eup %384  ;;  %v311_v6 = vmul.f32 %v383_v4, %v379_v0 }
 0x26d   :  { %v310_v7 = vmul.f32 %v385_v5, %v381_v1 }
 0x26e   :  { %v313_v8 = vsel %vm303_vm4, %v383_v4, %v311_v6 }
 0x26f   :  { %317 = vst.msk [vmem:[%s505_s7 + $0x8] sm:$0x3] %vm316_vm3, %v313_v8  ;;  %v312_v9 = vsel %vm302_vm6, %v385_v5, %v310_v7 }
 0x270   :  { %315 = vst.msk [vmem:[%s505_s7] sm:$0xff] %vm314_vm5, %v312_v9 }

</bundles_post_ra>
